<compile_context>
chip_gen: v7x
topology: tpu7x:2x2x1
jax: 0.10.0
libtpu: 0.0.40
codegen_flags: <defaults>
</compile_context>

<pallas_src>
import functools

import jax
import jax.numpy as jnp
import numpy as np
from jax.experimental import pallas as pl
from jax.experimental.pallas import tpu as pltpu


def _bytes(shape, dtype):
    return int(np.prod(shape)) * jnp.dtype(dtype).itemsize


def _gate_nonlin_dtype():
    """bf16 sigmoid/tanh on v6e/v7x (bf16 EUP path); f32 on v5e and older chips."""
    try:
        kind = jax.devices()[0].device_kind.lower()
    except Exception:
        return jnp.float32
    for old in ("v2", "v3", "v4", "v5"):
        if old in kind:
            return jnp.float32
    return jnp.bfloat16


# ----------------------------------------------------------------------------
# Fused per-timestep kernel: grid=(T,), serial ("arbitrary").
#   inputs : h0, c0 (f32, resident), x_t (bf16, streamed),
#            W_ih / (b_ih+b_hh) / W_hh / W_logit / b_logit (resident)
#   output : cap_logits_t (f32, streamed out)
#   scratch: h, c recurrent state (f32) carried across grid steps
# ----------------------------------------------------------------------------
def _captioning_step_kernel(h0_ref, c0_ref, x_ref, wih_ref, bg_ref, whh_ref,
                            wlog_ref, blog_ref, out_ref, h_sc, c_sc, *,
                            gate_dtype):
    f32 = jnp.float32
    H = h_sc.shape[-1]

    @pl.when(pl.program_id(0) == 0)
    def _init():
        h_sc[...] = h0_ref[...]
        c_sc[...] = c0_ref[...]

    h = h_sc[...]
    # x@W_ih has no dependence on the recurrent state, so its MXU latency hides
    # under the serial h@W_hh matmul issued right after it.
    gates = (jnp.dot(x_ref[...], wih_ref[...], preferred_element_type=f32)
             + jnp.dot(h.astype(whh_ref.dtype), whh_ref[...],
                       preferred_element_type=f32)
             + bg_ref[...])

    g = gates.astype(gate_dtype)            # bf16 EUP path on v6e/v7x, f32 on v5e
    i_g = jax.nn.sigmoid(g[:, 0 * H:1 * H]).astype(f32)
    f_g = jax.nn.sigmoid(g[:, 1 * H:2 * H]).astype(f32)
    g_g = jnp.tanh(g[:, 2 * H:3 * H]).astype(f32)
    o_g = jax.nn.sigmoid(g[:, 3 * H:4 * H]).astype(f32)

    c_new = f_g * c_sc[...] + i_g * g_g     # f32 fma, f32 cell state
    h_new = o_g * jnp.tanh(c_new.astype(gate_dtype)).astype(f32)
    c_sc[...] = c_new
    h_sc[...] = h_new

    # cap_logit projection for this step, straight from VMEM (no hs HBM round-trip).
    logits = (jnp.dot(h_new.astype(wlog_ref.dtype), wlog_ref[...],
                      preferred_element_type=f32) + blog_ref[...])
    out_ref[...] = logits.astype(out_ref.dtype)


# ----------------------------------------------------------------------------
# Full forward pass wrapper.
# ----------------------------------------------------------------------------
def captioning_pallas(feats_fc, xs, params):
    """xs: (T, B, E) embedded (and dropout-ed) caption tokens. Returns (T, B, V) f32."""
    T, B, E = xs.shape
    H = params["w_i2h"].shape[1]
    H4 = 4 * H
    V = params["w_logit"].shape[1]
    bf16, f32 = jnp.bfloat16, jnp.float32

    # state = (i2h(feats_fc), i2c(feats_fc)) — tiny (B rows), plain XLA.
    h0 = (feats_fc @ params["w_i2h"] + params["b_i2h"]).astype(f32)
    c0 = (feats_fc @ params["w_i2c"] + params["b_i2c"]).astype(f32)
    b_gates = (params["b_ih"] + params["b_hh"]).astype(f32)   # fold the two LSTM biases

    gate_dtype = _gate_nonlin_dtype()
    kernel = functools.partial(_captioning_step_kernel, gate_dtype=gate_dtype)

    # VMEM budget: streamed blocks are double-buffered; resident weights budgeted
    # x2 to be conservative; plus the state scratch and compiler headroom.
    vmem = (2 * (_bytes((B, E), bf16) + _bytes((B, V), f32))
            + 2 * (2 * _bytes((B, H), f32)
                   + _bytes((E, H4), bf16) + _bytes((1, H4), f32)
                   + _bytes((H, H4), bf16)
                   + _bytes((H, V), bf16) + _bytes((1, V), f32))
            + 2 * _bytes((B, H), f32)
            + (16 << 20))

    out = pl.pallas_call(
        kernel,
        out_shape=jax.ShapeDtypeStruct((T, B, V), f32),
        grid_spec=pltpu.PrefetchScalarGridSpec(
            num_scalar_prefetch=0,
            grid=(T,),
            in_specs=[
                pl.BlockSpec((B, H), lambda t: (0, 0)),            # h0 (resident)
                pl.BlockSpec((B, H), lambda t: (0, 0)),            # c0 (resident)
                pl.BlockSpec((None, B, E), lambda t: (t, 0, 0)),   # x_t (streamed in)
                pl.BlockSpec((E, H4), lambda t: (0, 0)),           # W_ih (resident)
                pl.BlockSpec((1, H4), lambda t: (0, 0)),           # b_ih + b_hh
                pl.BlockSpec((H, H4), lambda t: (0, 0)),           # W_hh (resident)
                pl.BlockSpec((H, V), lambda t: (0, 0)),            # W_logit (resident)
                pl.BlockSpec((1, V), lambda t: (0, 0)),            # b_logit
            ],
            out_specs=pl.BlockSpec((None, B, V), lambda t: (t, 0, 0)),
            scratch_shapes=[pltpu.VMEM((B, H), jnp.float32),       # h state (f32)
                            pltpu.VMEM((B, H), jnp.float32)],      # c state (f32)
        ),
        compiler_params=pltpu.CompilerParams(
            dimension_semantics=("arbitrary",),    # recurrence is inherently serial
            vmem_limit_bytes=int(vmem)),
    )(h0, c0, xs.astype(bf16),
      params["w_ih"].astype(bf16), b_gates,
      params["w_hh"].astype(bf16),
      params["w_logit"].astype(bf16), params["b_logit"].astype(f32))
    return out


def captioning_reference(feats_fc, xs, p):
    """Pure-JAX f32 reference of the same forward pass (for correctness check)."""
    h = feats_fc @ p["w_i2h"] + p["b_i2h"]
    c = feats_fc @ p["w_i2c"] + p["b_i2c"]
    H = h.shape[-1]

    def step(carry, x):
        h, c = carry
        gates = x @ p["w_ih"] + p["b_ih"] + h @ p["w_hh"] + p["b_hh"]
        i = jax.nn.sigmoid(gates[:, :H])
        f = jax.nn.sigmoid(gates[:, H:2 * H])
        g = jnp.tanh(gates[:, 2 * H:3 * H])
        o = jax.nn.sigmoid(gates[:, 3 * H:])
        c = f * c + i * g
        h = o * jnp.tanh(c)
        return (h, c), h @ p["w_logit"] + p["b_logit"]

    _, outs = jax.lax.scan(step, (h, c), xs)
    return outs


def _xavier(key, fan_in, fan_out):
    bound = float(np.sqrt(6.0 / (fan_in + fan_out)))
    return jax.random.uniform(key, (fan_in, fan_out), jnp.float32, -bound, bound)


def make_params(key, F_, E, H, V):
    ks = jax.random.split(key, 12)
    return {
        "w_i2h": _xavier(ks[0], F_, H), "b_i2h": jnp.zeros((1, H), jnp.float32),
        "w_i2c": _xavier(ks[1], F_, H), "b_i2c": jnp.zeros((1, H), jnp.float32),
        "w_ih": _xavier(ks[2], E, 4 * H),
        "b_ih": 0.01 * jax.random.normal(ks[3], (1, 4 * H), jnp.float32),
        "w_hh": _xavier(ks[4], H, 4 * H),
        "b_hh": 0.01 * jax.random.normal(ks[5], (1, 4 * H), jnp.float32),
        "w_logit": _xavier(ks[6], H, V),
        "b_logit": jnp.zeros((1, V), jnp.float32),
        "embed": 0.1 * jax.random.normal(ks[7], (V, E), jnp.float32),
    }


if __name__ == "__main__":
    # Small synthetic config (mirrors opts.*): fc_feat_dim=F_, embedding_size=E,
    # dec_cell_size=H, all_vocab_size=V, seq_len=SEQ (module runs SEQ-1 steps).
    # H and V kept as multiples of 128 for lane-aligned gate slices / stores.
    B, F_, E, H, V, SEQ = 8, 128, 128, 128, 256, 6
    T = SEQ - 1

    key = jax.random.PRNGKey(0)
    k_par, k_feat, k_cap = jax.random.split(key, 3)
    params = make_params(k_par, F_, E, H, V)

    feats_fc = jax.random.normal(k_feat, (B, F_), jnp.float32)
    caps = jax.random.randint(k_cap, (SEQ, B), 0, V)          # time-major like PyTorch

    # Glue: embedding lookup (gather) done in plain JAX; teacher-forced inputs caps[:T].
    # TODO(synk): F.dropout(xt, drop_prob) is stochastic; reproduced with drop_prob=0.
    xs = params["embed"][caps[:T]]                            # (T, B, E)

    cap_outs = captioning_pallas(feats_fc, xs, params)
    jax.block_until_ready(cap_outs)

    # bf16 matmul operands + bf16 gate nonlinearities (v6e/v7x) -> compare against the
    # f32 reference with a loosened-but-tight tolerance.
    ref = captioning_reference(feats_fc, xs, params)
    np.testing.assert_allclose(np.asarray(cap_outs), np.asarray(ref),
                               rtol=3e-2, atol=3e-2)

    # Module returns (cap_outs, noc_outs=[], (gt_ppx_outs=[], gf_ppx_outs=[]))
    # because cap_only=1 in forward(); the empty branches produce no tensors.
    _result = (cap_outs, [], ([], []))
    print("KERNEL_OK")
</pallas_src>

<mosaic_0001>
module attributes {stable_mosaic.version = 11 : i64} {
  func.func @_captioning_step_kernel(%arg0: i32, %arg1: memref<8x128xf32, #tpu.memory_space<vmem>>, %arg2: memref<8x128xf32, #tpu.memory_space<vmem>>, %arg3: memref<1x8x128xbf16, #tpu.memory_space<vmem>>, %arg4: memref<128x512xbf16, #tpu.memory_space<vmem>>, %arg5: memref<1x512xf32, #tpu.memory_space<vmem>>, %arg6: memref<128x512xbf16, #tpu.memory_space<vmem>>, %arg7: memref<128x256xbf16, #tpu.memory_space<vmem>>, %arg8: memref<1x256xf32, #tpu.memory_space<vmem>>, %arg9: memref<1x8x256xf32, #tpu.memory_space<vmem>>, %arg10: memref<8x128xf32, #tpu.memory_space<vmem>>, %arg11: memref<8x128xf32, #tpu.memory_space<vmem>>) attributes {dimension_semantics = [#tpu.dimension_semantics<arbitrary>], iteration_bounds = array<i64: 5>, scalar_prefetch = 0 : i64, scratch_operands = 2 : i64, tpu.core_type = #tpu.core_type<tc>, window_params = [{pipeline_mode = #tpu.pipeline_mode<synchronous>, transform_indices = @transform_0, window_bounds = array<i64: 8, 128>}, {pipeline_mode = #tpu.pipeline_mode<synchronous>, transform_indices = @transform_1, window_bounds = array<i64: 8, 128>}, {transform_indices = @transform_2, window_bounds = array<i64: 1, 8, 128>}, {pipeline_mode = #tpu.pipeline_mode<synchronous>, transform_indices = @transform_3, window_bounds = array<i64: 128, 512>}, {pipeline_mode = #tpu.pipeline_mode<synchronous>, transform_indices = @transform_4, window_bounds = array<i64: 1, 512>}, {pipeline_mode = #tpu.pipeline_mode<synchronous>, transform_indices = @transform_5, window_bounds = array<i64: 128, 512>}, {pipeline_mode = #tpu.pipeline_mode<synchronous>, transform_indices = @transform_6, window_bounds = array<i64: 128, 256>}, {pipeline_mode = #tpu.pipeline_mode<synchronous>, transform_indices = @transform_7, window_bounds = array<i64: 1, 256>}, {transform_indices = @transform_8, window_bounds = array<i64: 1, 8, 256>}]} {
    %c0_i32 = arith.constant 0 : i32
    %0 = arith.cmpi eq, %arg0, %c0_i32 : i32
    %1 = arith.extui %0 : i1 to i32
    %c0_i32_0 = arith.constant 0 : i32
    %2 = arith.cmpi ne, %1, %c0_i32_0 : i32
    scf.if %2 {
      %c0_29 = arith.constant 0 : index
      %c0_30 = arith.constant 0 : index
      %59 = vector.load %arg1[%c0_29, %c0_30] : memref<8x128xf32, #tpu.memory_space<vmem>>, vector<8x128xf32>
      %c0_31 = arith.constant 0 : index
      %c0_32 = arith.constant 0 : index
      %60 = vector.load %arg10[%c0_31, %c0_32] : memref<8x128xf32, #tpu.memory_space<vmem>>, vector<8x128xf32>
      tpu.vector_store %arg10[%c0_31, %c0_32], %59 {strides = array<i32>} : memref<8x128xf32, #tpu.memory_space<vmem>>, vector<8x128xf32>,
      %c0_33 = arith.constant 0 : index
      %c0_34 = arith.constant 0 : index
      %61 = vector.load %arg2[%c0_33, %c0_34] : memref<8x128xf32, #tpu.memory_space<vmem>>, vector<8x128xf32>
      %c0_35 = arith.constant 0 : index
      %c0_36 = arith.constant 0 : index
      %62 = vector.load %arg11[%c0_35, %c0_36] : memref<8x128xf32, #tpu.memory_space<vmem>>, vector<8x128xf32>
      tpu.vector_store %arg11[%c0_35, %c0_36], %61 {strides = array<i32>} : memref<8x128xf32, #tpu.memory_space<vmem>>, vector<8x128xf32>,
    } else {
    }
    %c0 = arith.constant 0 : index
    %c0_1 = arith.constant 0 : index
    %3 = vector.load %arg10[%c0, %c0_1] : memref<8x128xf32, #tpu.memory_space<vmem>>, vector<8x128xf32>
    %c0_2 = arith.constant 0 : index
    %c0_3 = arith.constant 0 : index
    %c0_4 = arith.constant 0 : index
    %4 = vector.load %arg3[%c0_2, %c0_3, %c0_4] : memref<1x8x128xbf16, #tpu.memory_space<vmem>>, vector<1x8x128xbf16>
    %5 = vector.shape_cast %4 : vector<1x8x128xbf16> to vector<8x128xbf16>
    %c0_5 = arith.constant 0 : index
    %c0_6 = arith.constant 0 : index
    %6 = vector.load %arg4[%c0_5, %c0_6] : memref<128x512xbf16, #tpu.memory_space<vmem>>, vector<128x512xbf16>
    %cst = arith.constant dense<0.000000e+00> : vector<8x512xf32>
    %7 = tpu.matmul %5, %6, %cst {dimension_numbers = #tpu.dot_dimension_numbers<[1], [0], [0], [1], [0, 0, 1, 1], [], []>} : vector<8x128xbf16>, vector<128x512xbf16>, vector<8x512xf32> -> vector<8x512xf32>
    %8 = arith.truncf %3 : vector<8x128xf32> to vector<8x128xbf16>
    %c0_7 = arith.constant 0 : index
    %c0_8 = arith.constant 0 : index
    %9 = vector.load %arg6[%c0_7, %c0_8] : memref<128x512xbf16, #tpu.memory_space<vmem>>, vector<128x512xbf16>
    %cst_9 = arith.constant dense<0.000000e+00> : vector<8x512xf32>
    %10 = tpu.matmul %8, %9, %cst_9 {dimension_numbers = #tpu.dot_dimension_numbers<[1], [0], [0], [1], [0, 0, 1, 1], [], []>} : vector<8x128xbf16>, vector<128x512xbf16>, vector<8x512xf32> -> vector<8x512xf32>
    %11 = arith.addf %7, %10 : vector<8x512xf32>
    %c0_10 = arith.constant 0 : index
    %c0_11 = arith.constant 0 : index
    %12 = vector.load %arg5[%c0_10, %c0_11] : memref<1x512xf32, #tpu.memory_space<vmem>>, vector<1x512xf32>
    %13 = vector.broadcast %12 : vector<1x512xf32> to vector<8x512xf32>
    %14 = arith.addf %11, %13 : vector<8x512xf32>
    %15 = arith.truncf %14 : vector<8x512xf32> to vector<8x512xbf16>
    %16 = vector.extract_strided_slice %15 {offsets = [0, 0], sizes = [8, 128], strides = [1, 1]} : vector<8x512xbf16> to vector<8x128xbf16>
    %17 = arith.negf %16 : vector<8x128xbf16>
    %18 = math.exp %17 : vector<8x128xbf16>
    %cst_12 = arith.constant 1.000000e+00 : bf16
    %19 = vector.broadcast %cst_12 : bf16 to vector<8x128xbf16>
    %20 = arith.addf %19, %18 : vector<8x128xbf16>
    %21 = arith.divf %19, %20 : vector<8x128xbf16>
    %22 = arith.extf %21 : vector<8x128xbf16> to vector<8x128xf32>
    %23 = vector.extract_strided_slice %15 {offsets = [0, 128], sizes = [8, 128], strides = [1, 1]} : vector<8x512xbf16> to vector<8x128xbf16>
    %24 = arith.negf %23 : vector<8x128xbf16>
    %25 = math.exp %24 : vector<8x128xbf16>
    %cst_13 = arith.constant 1.000000e+00 : bf16
    %26 = vector.broadcast %cst_13 : bf16 to vector<8x128xbf16>
    %27 = arith.addf %26, %25 : vector<8x128xbf16>
    %28 = arith.divf %26, %27 : vector<8x128xbf16>
    %29 = arith.extf %28 : vector<8x128xbf16> to vector<8x128xf32>
    %30 = vector.extract_strided_slice %15 {offsets = [0, 256], sizes = [8, 128], strides = [1, 1]} : vector<8x512xbf16> to vector<8x128xbf16>
    %31 = math.tanh %30 : vector<8x128xbf16>
    %32 = arith.extf %31 : vector<8x128xbf16> to vector<8x128xf32>
    %33 = vector.extract_strided_slice %15 {offsets = [0, 384], sizes = [8, 128], strides = [1, 1]} : vector<8x512xbf16> to vector<8x128xbf16>
    %34 = arith.negf %33 : vector<8x128xbf16>
    %35 = math.exp %34 : vector<8x128xbf16>
    %cst_14 = arith.constant 1.000000e+00 : bf16
    %36 = vector.broadcast %cst_14 : bf16 to vector<8x128xbf16>
    %37 = arith.addf %36, %35 : vector<8x128xbf16>
    %38 = arith.divf %36, %37 : vector<8x128xbf16>
    %39 = arith.extf %38 : vector<8x128xbf16> to vector<8x128xf32>
    %c0_15 = arith.constant 0 : index
    %c0_16 = arith.constant 0 : index
    %40 = vector.load %arg11[%c0_15, %c0_16] : memref<8x128xf32, #tpu.memory_space<vmem>>, vector<8x128xf32>
    %41 = arith.mulf %29, %40 : vector<8x128xf32>
    %42 = arith.mulf %22, %32 : vector<8x128xf32>
    %43 = arith.addf %41, %42 : vector<8x128xf32>
    %44 = arith.truncf %43 : vector<8x128xf32> to vector<8x128xbf16>
    %45 = math.tanh %44 : vector<8x128xbf16>
    %46 = arith.extf %45 : vector<8x128xbf16> to vector<8x128xf32>
    %47 = arith.mulf %39, %46 : vector<8x128xf32>
    %c0_17 = arith.constant 0 : index
    %c0_18 = arith.constant 0 : index
    %48 = vector.load %arg11[%c0_17, %c0_18] : memref<8x128xf32, #tpu.memory_space<vmem>>, vector<8x128xf32>
    tpu.vector_store %arg11[%c0_17, %c0_18], %43 {strides = array<i32>} : memref<8x128xf32, #tpu.memory_space<vmem>>, vector<8x128xf32>,
    %c0_19 = arith.constant 0 : index
    %c0_20 = arith.constant 0 : index
    %49 = vector.load %arg10[%c0_19, %c0_20] : memref<8x128xf32, #tpu.memory_space<vmem>>, vector<8x128xf32>
    tpu.vector_store %arg10[%c0_19, %c0_20], %47 {strides = array<i32>} : memref<8x128xf32, #tpu.memory_space<vmem>>, vector<8x128xf32>,
    %50 = arith.truncf %47 : vector<8x128xf32> to vector<8x128xbf16>
    %c0_21 = arith.constant 0 : index
    %c0_22 = arith.constant 0 : index
    %51 = vector.load %arg7[%c0_21, %c0_22] : memref<128x256xbf16, #tpu.memory_space<vmem>>, vector<128x256xbf16>
    %cst_23 = arith.constant dense<0.000000e+00> : vector<8x256xf32>
    %52 = tpu.matmul %50, %51, %cst_23 {dimension_numbers = #tpu.dot_dimension_numbers<[1], [0], [0], [1], [0, 0, 1, 1], [], []>} : vector<8x128xbf16>, vector<128x256xbf16>, vector<8x256xf32> -> vector<8x256xf32>
    %c0_24 = arith.constant 0 : index
    %c0_25 = arith.constant 0 : index
    %53 = vector.load %arg8[%c0_24, %c0_25] : memref<1x256xf32, #tpu.memory_space<vmem>>, vector<1x256xf32>
    %54 = vector.broadcast %53 : vector<1x256xf32> to vector<8x256xf32>
    %55 = arith.addf %52, %54 : vector<8x256xf32>
    %c0_26 = arith.constant 0 : index
    %c0_27 = arith.constant 0 : index
    %c0_28 = arith.constant 0 : index
    %56 = vector.load %arg9[%c0_26, %c0_27, %c0_28] : memref<1x8x256xf32, #tpu.memory_space<vmem>>, vector<1x8x256xf32>
    %57 = vector.shape_cast %56 : vector<1x8x256xf32> to vector<8x256xf32>
    %58 = vector.shape_cast %55 : vector<8x256xf32> to vector<1x8x256xf32>
    tpu.vector_store %arg9[%c0_26, %c0_27, %c0_28], %58 {strides = array<i32>} : memref<1x8x256xf32, #tpu.memory_space<vmem>>, vector<1x8x256xf32>,
    return
  }
  func.func @transform_0(%arg0: i32) -> (i32, i32) {
    %c0_i32 = arith.constant 0 : i32
    %c0_i32_0 = arith.constant 0 : i32
    %c0_i32_1 = arith.constant 0 : i32
    return %c0_i32, %c0_i32_0 : i32, i32
  }
  func.func @transform_1(%arg0: i32) -> (i32, i32) {
    %c0_i32 = arith.constant 0 : i32
    %c0_i32_0 = arith.constant 0 : i32
    %c0_i32_1 = arith.constant 0 : i32
    return %c0_i32, %c0_i32_0 : i32, i32
  }
  func.func @transform_2(%arg0: i32) -> (i32, i32, i32) {
    %c0_i32 = arith.constant 0 : i32
    %c0_i32_0 = arith.constant 0 : i32
    %c0_i32_1 = arith.constant 0 : i32
    return %arg0, %c0_i32, %c0_i32_0 : i32, i32, i32
  }
  func.func @transform_3(%arg0: i32) -> (i32, i32) {
    %c0_i32 = arith.constant 0 : i32
    %c0_i32_0 = arith.constant 0 : i32
    %c0_i32_1 = arith.constant 0 : i32
    return %c0_i32, %c0_i32_0 : i32, i32
  }
  func.func @transform_4(%arg0: i32) -> (i32, i32) {
    %c0_i32 = arith.constant 0 : i32
    %c0_i32_0 = arith.constant 0 : i32
    %c0_i32_1 = arith.constant 0 : i32
    return %c0_i32, %c0_i32_0 : i32, i32
  }
  func.func @transform_5(%arg0: i32) -> (i32, i32) {
    %c0_i32 = arith.constant 0 : i32
    %c0_i32_0 = arith.constant 0 : i32
    %c0_i32_1 = arith.constant 0 : i32
    return %c0_i32, %c0_i32_0 : i32, i32
  }
  func.func @transform_6(%arg0: i32) -> (i32, i32) {
    %c0_i32 = arith.constant 0 : i32
    %c0_i32_0 = arith.constant 0 : i32
    %c0_i32_1 = arith.constant 0 : i32
    return %c0_i32, %c0_i32_0 : i32, i32
  }
  func.func @transform_7(%arg0: i32) -> (i32, i32) {
    %c0_i32 = arith.constant 0 : i32
    %c0_i32_0 = arith.constant 0 : i32
    %c0_i32_1 = arith.constant 0 : i32
    return %c0_i32, %c0_i32_0 : i32, i32
  }
  func.func @transform_8(%arg0: i32) -> (i32, i32, i32) {
    %c0_i32 = arith.constant 0 : i32
    %c0_i32_0 = arith.constant 0 : i32
    %c0_i32_1 = arith.constant 0 : i32
    return %arg0, %c0_i32, %c0_i32_0 : i32, i32, i32
  }
}

</mosaic_0001>

<bundles_post_ra>
// kernel: tpu_custom_call.1
= control target key start
LH: loop header
LB: loop body
LE: loop exit
PB: predicated region body
PF: predicated region fallthrough
CT: control target
= control target key end

     0   :  { %s2284_s0 = inlined_call_operand.hbm [shape: f32[8,128], index: 0, kind: input, shape index: {}]   ;;  %s2285_s1 = inlined_call_operand.hbm [shape: f32[8,128], index: 1, kind: input, shape index: {}]   ;;  %s2286_s2 = inlined_call_operand.hbm [shape: bf16[5,8,128], index: 2, kind: input, shape index: {}]   ;;  %s2287_s3 = inlined_call_operand.hbm [shape: bf16[128,512], index: 3, kind: input, shape index: {}]   ;;  %s2288_s4 = inlined_call_operand.vmem [shape: f32[1,512], index: 4, kind: input, shape index: {}]   ;;  %s2289_s5 = inlined_call_operand.hbm [shape: bf16[128,512], index: 5, kind: input, shape index: {}]   ;;  %s2290_s6 = inlined_call_operand.hbm [shape: bf16[128,256], index: 6, kind: input, shape index: {}]   ;;  %s2291_s7 = inlined_call_operand.vmem [shape: f32[1,256], index: 7, kind: input, shape index: {}]   ;;  %s2292_s8 = inlined_call_operand.hbm [shape: f32[5,8,256], index: 8, kind: output, shape index: {}]  }
   0x1   :  { %2296 = sst [smem:[#allocation21_spill]] %s2284_s0 }
   0x2   :  { %2297 = sst [smem:[#allocation22_spill]] %s2285_s1 }
   0x3   :  { %13 = vsyncpa [#allocation5], 0 }
   0x4   :  { %14 = vsyncpa [#allocation8], 0 }
   0x5   :  { %15 = vsyncpa [#allocation12], 0 }
   0x6   :  { %16 = vsyncpa [#allocation6], 0 }
   0x7   :  { %18 = vsyncpa [#allocation6 + $0x1], 0  ;;  %s1955_s27 = smov 0   ;;  %s1957_s28 = smov 0  }
   0x8   :  { %s1959_s29 = smov 0   ;;  %s1961_s30 = smov 0  }
   0x9 LB: > { %s1898_s9 = smov [#allocation4]   ;;  %s1976_s11 = sadd.s32 4294967295, %s1896_s30   ;;  %s1896_s30 = sphi %s1961_s30, %s2323_s30   ;;  %s1892_s29 = sphi %s1959_s29, %s2322_s29   ;;  %s1888_s28 = sphi %s1957_s28, %s2321_s28   ;;  %s1884_s27 = sphi %s1955_s27, %s2320_s27  }
   0xa   : > { %s241_s10 = sshll.u32 %s1898_s9, 4  ;;  %p1299_p0 = scmp.ge.s32.totalorder %s1896_s30, 1  ;;  %s242_s10 = int_to_ptr.vmem [resolvable:$true] %s241_s10 }
   0xb   : > { %p2293_p1 = scmp.eq.s32.totalorder %s1976_s11, 0  ;;  %p228_p2 = scmp.lt.s32.totalorder %s1896_s30, 6 }
   0xc   : > { %s1899_s13 = smov [#allocation7]   ;;  %s1900_s16 = smov [#allocation11]  }
   0xd   : > { %p1982_p4 = pnand %p1299_p0, %p228_p2  ;;  %s252_s14 = sshll.u32 %s1899_s13, 4  ;;  %s1988_s14 = int_to_ptr.vmem [resolvable:$true] %s252_s14 }
   0xe   : > { %s278_s17 = sshll.u32 %s1900_s16, 4  ;;  %s2300_s0 = sld [smem:[#allocation21_spill]]  ;;  %s1996_s17 = int_to_ptr.vmem [resolvable:$true] %s278_s17 }
   0xf   : > { %s2298_s12 = scalar_select %p1982_p4, 1, 0 }
  0x10   : > { %p1430_p5 = pneg %p1982_p4 }
  0x12   : > { %p1992_p6 = pnand %p1430_p5, %p2293_p1 }
  0x14   : > { %s1644_s20 = scalar_lea.hbm %s2300_s0, 128  ;;  %p2006_p8 = pneg %p1992_p6 }
  0x15   : > { %p1645_p7 = scmp.ne.s32.totalorder %s2300_s0, %s1644_s20  ;;  %p1651_p11 = scmp.lt.u32.totalorder %s1644_s20, %s2300_s0 }
  0x17   : > { %p1647_p9 = pnand %p2006_p8, %p1645_p7 }
  0x19   : > { %p1648_p10 = pneg %p1647_p9 }
  0x1b   : > { %p1653_p12 = pnand %p1651_p11, %p1648_p10 }
  0x1d   : > { %1656 = shalt.err (!%p1653_p12)
}
  0x1e   : > { %s1657_s26 = scalar_lea.vmem %s242_s10, 128  ;;  %p1665_p5 = scmp.lt.s32.totalorder %s242_s10, %s242_s10 }
  0x1f   : > { %p1658_p13 = scmp.ne.s32.totalorder %s242_s10, %s1657_s26  ;;  %p1666_p3 = scmp.lt.s32.totalorder %s1657_s26, %s1657_s26 }
  0x21   : > { %p1660_p0 = pnand %p1658_p13, %p2006_p8  ;;  %p1667_p1 = por %p1666_p3, %p1665_p5 }
  0x23   : > { %p1661_p2 = pneg %p1660_p0 }
  0x25   : > { %p1668_p4 = pnand %p1667_p1, %p1661_p2 }
  0x27   : > { %1671 = shalt.err (!%p1668_p4)
}
  0x28   : > { %1433 = dma.hbm_to_vmem [thread:$0]  (!%p1992_p6), %s2300_s0, 128, %s242_s10, [#allocation5]  }
  0x29   : > { %s2302_s1 = sld [smem:[#allocation22_spill]] }
  0x2f   : > { %s1672_s19 = scalar_lea.hbm %s2302_s1, 128 }
  0x30   : > { %p1673_p7 = scmp.ne.s32.totalorder %s2302_s1, %s1672_s19  ;;  %p1679_p1 = scmp.lt.u32.totalorder %s1672_s19, %s2302_s1 }
  0x32   : > { %p1675_p9 = pnand %p1673_p7, %p2006_p8 }
  0x34   : > { %p1676_p3 = pneg %p1675_p9 }
  0x36   : > { %p1681_p4 = pnand %p1679_p1, %p1676_p3 }
  0x38   : > { %1684 = shalt.err (!%p1681_p4)
}
  0x39   : > { %s1685_s10 = scalar_lea.vmem %s1988_s14, 128  ;;  %p1693_p13 = scmp.lt.s32.totalorder %s1988_s14, %s1988_s14 }
  0x3a   : > { %p1686_p10 = scmp.ne.s32.totalorder %s1988_s14, %s1685_s10  ;;  %p1694_p0 = scmp.lt.s32.totalorder %s1685_s10, %s1685_s10 }
  0x3c   : > { %p1688_p11 = pnand %p1686_p10, %p2006_p8  ;;  %p1695_p2 = por %p1694_p0, %p1693_p13 }
  0x3e   : > { %p1689_p12 = pneg %p1688_p11 }
  0x40   : > { %p1696_p5 = pnand %p1695_p2, %p1689_p12 }
  0x42   : > { %1699 = shalt.err (!%p1696_p5)
}
  0x43   : > { %1436 = dma.hbm_to_vmem [thread:$0]  (!%p1992_p6), %s2302_s1, 128, %s1988_s14, [#allocation8]  }
  0x44   : > { %s1700_s16 = scalar_lea.hbm %s2289_s5, 4096 }
  0x45   : > { %p1701_p7 = scmp.ne.s32.totalorder %s2289_s5, %s1700_s16  ;;  %p1707_p1 = scmp.lt.u32.totalorder %s1700_s16, %s2289_s5 }
  0x47   : > { %p1703_p9 = pnand %p1701_p7, %p2006_p8 }
  0x49   : > { %p1704_p3 = pneg %p1703_p9 }
  0x4b   : > { %p1709_p4 = pnand %p1707_p1, %p1704_p3 }
  0x4d   : > { %1712 = shalt.err (!%p1709_p4)
}
  0x4e   : > { %s1713_s14 = scalar_lea.vmem %s1996_s17, 4096  ;;  %p1721_p13 = scmp.lt.s32.totalorder %s1996_s17, %s1996_s17 }
  0x4f   : > { %p1714_p10 = scmp.ne.s32.totalorder %s1996_s17, %s1713_s14  ;;  %p1722_p0 = scmp.lt.s32.totalorder %s1713_s14, %s1713_s14 }
  0x51   : > { %p1716_p11 = pnand %p1714_p10, %p2006_p8  ;;  %p1723_p2 = por %p1722_p0, %p1721_p13 }
  0x53   : > { %p1717_p12 = pneg %p1716_p11 }
  0x55   : > { %p1724_p5 = pnand %p1723_p2, %p1717_p12 }
  0x57   : > { %1727 = shalt.err (!%p1724_p5)
}
  0x58   : > { %s1901_s22 = smov 256   ;;  %s1902_s24 = smov 16  }
  0x59   : > { %1442 = dma.hbm_to_vmem [thread:$0]  (!%p1992_p6), %s2289_s5, 4096, %s1996_s17, [#allocation12], %s1901_s22, %s1901_s22, %s1902_s24  }
  0x5a   : > { %s1903_s26 = smov [#allocation10]   ;;  %s1904_s13 = smov [#allocation13]  }
  0x5b   : > { %s262_s9 = sshll.u32 %s1903_s26, 4  ;;  %s291_s16 = sshll.u32 %s1904_s13, 4  ;;  %s263_s9 = int_to_ptr.vmem [resolvable:$true] %s262_s9  ;;  %s292_s16 = int_to_ptr.vmem [resolvable:$true] %s291_s16 }
  0x5c   : > { %s1728_s20 = scalar_lea.hbm %s2287_s3, 4096 }
  0x5d   : > { %p1729_p7 = scmp.ne.s32.totalorder %s2287_s3, %s1728_s20  ;;  %p1735_p1 = scmp.lt.u32.totalorder %s1728_s20, %s2287_s3 }
  0x5f   : > { %p1731_p9 = pnand %p1729_p7, %p2006_p8 }
  0x61   : > { %p1732_p3 = pneg %p1731_p9 }
  0x63   : > { %p1737_p4 = pnand %p1735_p1, %p1732_p3 }
  0x65   : > { %1740 = shalt.err (!%p1737_p4)
}
  0x66   : > { %s1741_s17 = scalar_lea.vmem %s263_s9, 4096  ;;  %p1749_p13 = scmp.lt.s32.totalorder %s263_s9, %s263_s9 }
  0x67   : > { %p1742_p10 = scmp.ne.s32.totalorder %s263_s9, %s1741_s17  ;;  %p1750_p0 = scmp.lt.s32.totalorder %s1741_s17, %s1741_s17 }
  0x69   : > { %p1744_p11 = pnand %p1742_p10, %p2006_p8  ;;  %p1751_p2 = por %p1750_p0, %p1749_p13 }
  0x6b   : > { %p1745_p12 = pneg %p1744_p11 }
  0x6d   : > { %p1752_p5 = pnand %p1751_p2, %p1745_p12 }
  0x6f   : > { %1755 = shalt.err (!%p1752_p5)
}
  0x70   : > { %1439 = dma.hbm_to_vmem [thread:$0]  (!%p1992_p6), %s2287_s3, 4096, %s263_s9, [#allocation8], %s1901_s22, %s1901_s22, %s1902_s24  }
  0x71   : > { %s1756_s26 = scalar_lea.hbm %s2290_s6, 2048 }
  0x72   : > { %p1757_p7 = scmp.ne.s32.totalorder %s2290_s6, %s1756_s26  ;;  %p1763_p1 = scmp.lt.u32.totalorder %s1756_s26, %s2290_s6 }
  0x74   : > { %p1759_p9 = pnand %p1757_p7, %p2006_p8 }
  0x76   : > { %p1760_p3 = pneg %p1759_p9 }
  0x78   : > { %p1765_p4 = pnand %p1763_p1, %p1760_p3 }
  0x7a   : > { %1768 = shalt.err (!%p1765_p4)
}
  0x7b   : > { %s1769_s21 = scalar_lea.vmem %s292_s16, 2048  ;;  %p1777_p13 = scmp.lt.s32.totalorder %s292_s16, %s292_s16 }
  0x7c   : > { %p1770_p10 = scmp.ne.s32.totalorder %s292_s16, %s1769_s21  ;;  %p1778_p0 = scmp.lt.s32.totalorder %s1769_s21, %s1769_s21 }
  0x7e   : > { %p1772_p11 = pnand %p1770_p10, %p2006_p8  ;;  %p1779_p2 = por %p1778_p0, %p1777_p13 }
  0x80   : > { %p1773_p12 = pneg %p1772_p11 }
  0x82   : > { %p1780_p5 = pnand %p1779_p2, %p1773_p12 }
  0x84   : > { %1783 = shalt.err (!%p1780_p5)
}
  0x85   : > { %s1905_s22 = smov 128   ;;  %s1906_s23 = smov 8  }
  0x86   : > { %1445 = dma.hbm_to_vmem [thread:$0]  (!%p1992_p6), %s2290_s6, 2048, %s292_s16, [#allocation12], %s1905_s22, %s1905_s22, %s1906_s23  }
  0x87   : > { %s1298_s14 = sadd.s32 4294967294, %s1896_s30   ;;  %s2106_s17 = sadd.s32 1, %s1896_s30  }
  0x88   : > { %s73_s10 = sadd.s32 1, %s1892_s29  ;;  %s70_s25 = ssub.s32 %s1896_s30, %s2106_s17 }
  0x89   : > { %p80_p8 = scmp.ne.s32.totalorder %s1892_s29, %s1888_s28  ;;  %p71_p7 = scmp.eq.s32.totalorder %s70_s25, 0 }
  0x8a   : > { %p81_p9 = scmp.eq.s32.totalorder %s1896_s30, 0  ;;  %p86_p3 = scmp.ne.s32.totalorder %s1888_s28, %s1884_s27 }
  0x8b   : > { %p215_p1 = scmp.eq.s32.totalorder %s1976_s11, 4  ;;  %p2303_p10 = scmp.eq.s32.totalorder %s1976_s11, 0 }
  0x8c   : > { %s2118_s15 = scalar_select %p71_p7, %s1892_s29, %s73_s10  }
  0x8d   : > { %p82_p4 = por %p81_p9, %p80_p8  ;;  %p2122_p11 = por %p2303_p10, %p86_p3 }
  0x8e   : > { %p2126_p6 = por %p215_p1, %p80_p8  ;;  %p221_p12 = scmp.eq.s32.totalorder %s1298_s14, 4 }
  0x8f   : > { %p1459_p13 = scmp.lt.s32.totalorder %s1896_s30, 5  ;;  %s308_s1 = sand.u32 1, %s1896_s30  }
  0x90   : > { %s2305_s0 = scalar_select %p2126_p6, 1, 0 }
  0x91   : > { %p2132_p0 = por %p221_p12, %p86_p3  ;;  %s310_s13 = sand.u32 1, %s1892_s29  }
  0x92   : > { %s1307_s18 = sshll.u32 %s1896_s30, 6  ;;  %s1306_s19 = sshll.u32 %s310_s13, 2 }
  0x93   : > { %s2306_s26 = scalar_select %p2132_p0, 1, 0 }
  0x94   : > { %s2141_s22 = scalar_lea.hbm %s2286_s2, %s1307_s18  ;;  %p2143_p2 = pnand %p1459_p13, %p82_p4 }
  0x95   : > { %s312_s24 = scalar_lea.vmem [#allocation9], %s1306_s19  ;;  %s309_s14 = scalar_lea.sflag [#allocation5], %s308_s1 }
  0x96   : > { %s319_s9 = sshll.u32 %s312_s24, 4  ;;  %s1784_s10 = scalar_lea.hbm %s2141_s22, 64  ;;  %s2147_s9 = int_to_ptr.vmem [resolvable:$true] %s319_s9 }
  0x97   : > { %p1785_p5 = scmp.ne.s32.totalorder %s2141_s22, %s1784_s10  ;;  %p1786_p8 = pneg %p2143_p2 }
  0x98   : > { %s1789_s18 = scalar_lea.hbm %s2286_s2, 320  ;;  %p1790_p3 = scmp.lt.u32.totalorder %s2141_s22, %s2286_s2 }
  0x99   : > { %p1787_p7 = pnand %p1786_p8, %p1785_p5  ;;  %p1791_p1 = scmp.lt.u32.totalorder %s1789_s18, %s1784_s10 }
  0x9a   : > { %p1793_p10 = scmp.lt.u32.totalorder %s1784_s10, %s2141_s22 }
  0x9b   : > { %p1788_p9 = pneg %p1787_p7  ;;  %p1792_p4 = por %p1791_p1, %p1790_p3 }
  0x9d   : > { %p1794_p12 = por %p1793_p10, %p1792_p4 }
  0x9f   : > { %p1795_p13 = pnand %p1794_p12, %p1788_p9 }
  0xa1   : > { %1798 = shalt.err (!%p1795_p13)
}
  0xa2   : > { %s1799_s1 = scalar_lea.vmem %s2147_s9, 64  ;;  %s1907_s19 = smov [#allocation9]  }
  0xa3   : > { %p1800_p5 = scmp.ne.s32.totalorder %s2147_s9, %s1799_s1  ;;  %s1804_s24 = sshll.u32 %s1907_s19, 4  ;;  %s1805_s24 = int_to_ptr.vmem [resolvable:$false] %s1804_s24 }
  0xa4   : > { %s1806_s25 = scalar_lea.vmem %s1805_s24, 128  ;;  %p1807_p6 = scmp.lt.s32.totalorder %s2147_s9, %s1805_s24 }
  0xa5   : > { %p1802_p7 = pnand %p1800_p5, %p1786_p8  ;;  %p1808_p3 = scmp.lt.s32.totalorder %s1806_s25, %s1799_s1 }
  0xa7   : > { %p1803_p0 = pneg %p1802_p7  ;;  %p1809_p1 = por %p1808_p3, %p1807_p6 }
  0xa9   : > { %p1810_p4 = pnand %p1809_p1, %p1803_p0 }
  0xab   : > { %1813 = shalt.err (!%p1810_p4)
}
  0xac   : > { %1449 = dma.hbm_to_vmem [thread:$0]  (!%p2143_p2), %s2141_s22, 64, %s2147_s9, %s309_s14  }
  0xad   : > { %p2308_p9 = scmp.ne.s32.totalorder %s2298_s12, 0 }
  0xae   : > { %p2309_p8 = scmp.eq.s32.totalorder (!%p2308_p9), %s1976_s11, 0 }
  0xaf   : > { %328 = sbr.rel (%p2308_p9) target bundleno = 775 (0x307), region = 52 }
  0xb6   : > { %1859 = dma.done.wait (%p2309_p8), [#allocation5], 128   ;;  %p2310_p10 = pmov %p2309_p8 }
  0xb7   : > { %p2311_p12 = pmov %p2309_p8 }
  0xb8   : > { %1861 = vsyncadd (%p2310_p10), [#allocation5], 4294967168 }
  0xb9   : > { %1863 = dma.done.wait (%p2311_p12), [#allocation8], 128   ;;  %p2312_p6 = pmov %p2309_p8 }
  0xba   : > { %s338_s23 = sand.u32 1, %s1976_s11   ;;  %s2186_s22 = sand.u32 1, %s1888_s28  }
  0xbb   : > { %1865 = vsyncadd (%p2312_p6), [#allocation8], 4294967168  ;;  %s1311_s12 = sshll.u32 %s2186_s22, 2  ;;  %s339_s9 = scalar_lea.sflag [#allocation5], %s338_s23 }
  0xbc   : > { %s2189_s14 = scalar_lea.vmem [#allocation9], %s1311_s12 }
  0xbd   : > { %1867 = dma.done.wait (%p2122_p11), %s339_s9, 64  }
  0xbe   : > { %1869 = vsyncadd (%p2122_p11), %s339_s9, 4294967232  ;;  %p2313_p0 = pmov %p2312_p6 }
  0xc0   : > { %1871 = dma.done.wait (%p2313_p0), [#allocation8], 4096   ;;  %p2314_p2 = pmov %p2313_p0 }
  0xc1   : > { %p2315_p13 = pmov %p2313_p0 }
  0xc2   : > { %1873 = vsyncadd (%p2314_p2), [#allocation8], 4294963200 }
  0xc3   : > { %1875 = dma.done.wait (%p2315_p13), [#allocation12], 6144   ;;  %p2316_p5 = pmov %p2313_p0 }
  0xc4   : > { %s1315_s10 = sshll.u32 %s2186_s22, 4  ;;  %p2317_p7 = scmp.ne.s32.totalorder %s1976_s11, 0 }
  0xc5   : > { %1877 = vsyncadd (%p2316_p5), [#allocation12], 4294961152  ;;  %s2204_s13 = scalar_lea.vmem [#allocation14], %s1315_s10  ;;  %v393_v0 = vld [vmem:[#allocation4] sm:$0xff] (!%p2317_p7)  ;;  %v395_v1 = vld [vmem:[#allocation7] sm:$0xff] (!%p2317_p7) }
  0xc6   : > { %392 = sbr.rel (%p2317_p7) target bundleno = 205 (0xcd), region = 80  ;;  %394 = vst [vmem:[#allocation2] sm:$0xff] (!%p2317_p7), %v393_v0  ;;  %396 = vst [vmem:[#allocation3] sm:$0xff] (!%p2317_p7), %v395_v1 }
  0xcd PF: > { %v1508_v2 = vld [vmem:[#allocation11 + $0x4] ss:$16 sps:$4 sm:$0xff]   ;;  %v1510_v3 = vld [vmem:[#allocation11 + $0xc] ss:$16 sps:$4 sm:$0xff]   ;;  %v1908_v4 = vmov 0   ;;  %s1405_s1 = sshll.u32 %s1976_s11, 8 }
  0xce   : > { %656 = vmatprep.mubr.bf16.mxu0 %v1908_v4  ;;  %697 = vmatprep.mubr.bf16.mxu1 %v1908_v4  ;;  %v1512_v5 = vld [vmem:[#allocation11] ss:$16 sps:$4 sm:$0xff]   ;;  %v1513_v6 = vld [vmem:[#allocation11 + $0x8] ss:$16 sps:$4 sm:$0xff]   ;;  %v1514_v7 = vld [vmem:[#allocation11 + $0x24] ss:$16 sps:$4 sm:$0xff]   ;;  %s2239_s23 = scalar_lea.hbm %s2292_s8, %s1405_s1 }
  0xcf   : > { %624 = vmatprep.subr.bf16.mxu0 %v1508_v2  ;;  %665 = vmatprep.subr.bf16.mxu1 %v1510_v3  ;;  %v1516_v8 = vld [vmem:[#allocation11 + $0x2c] ss:$16 sps:$4 sm:$0xff]   ;;  %v1518_v9 = vld [vmem:[#allocation11 + $0x20] ss:$16 sps:$4 sm:$0xff]   ;;  %v1519_v10 = vld [vmem:[#allocation11 + $0x28] ss:$16 sps:$4 sm:$0xff]  }
  0xd0   : > { %625 = vmatpush1.bf16.msra.mxu0 %v1512_v5  ;;  %666 = vmatpush1.bf16.msra.mxu1 %v1513_v6  ;;  %v1520_v11 = vld [vmem:[#allocation11 + $0x44] ss:$16 sps:$4 sm:$0xff]   ;;  %v1522_v12 = vld [vmem:[#allocation11 + $0x4c] ss:$16 sps:$4 sm:$0xff]   ;;  %v1524_v13 = vld [vmem:[#allocation11 + $0x40] ss:$16 sps:$4 sm:$0xff]  }
  0xd1   : > { %626 = vmatprep.subr.bf16.mxu0 %v1514_v7  ;;  %667 = vmatprep.subr.bf16.mxu1 %v1516_v8  ;;  %v1525_v14 = vld [vmem:[#allocation11 + $0x48] ss:$16 sps:$4 sm:$0xff]   ;;  %v1526_v15 = vld [vmem:[#allocation11 + $0x64] ss:$16 sps:$4 sm:$0xff]   ;;  %v1528_v16 = vld [vmem:[#allocation11 + $0x6c] ss:$16 sps:$4 sm:$0xff]  }
  0xd2   : > { %v1530_v17 = vld [vmem:[#allocation11 + $0x60] ss:$16 sps:$4 sm:$0xff]   ;;  %v1531_v18 = vld [vmem:[#allocation11 + $0x68] ss:$16 sps:$4 sm:$0xff]   ;;  %v1532_v19 = vld [vmem:[#allocation11 + $0x84] ss:$16 sps:$4 sm:$0xff]  }
  0xd3   : > { %v1534_v20 = vld [vmem:[#allocation11 + $0x8c] ss:$16 sps:$4 sm:$0xff]   ;;  %v1536_v21 = vld [vmem:[#allocation11 + $0x80] ss:$16 sps:$4 sm:$0xff]   ;;  %v1537_v22 = vld [vmem:[#allocation11 + $0x88] ss:$16 sps:$4 sm:$0xff]  }
  0xd4   : > { %627 = vmatpush1.bf16.msra.mxu0 %v1518_v9  ;;  %668 = vmatpush1.bf16.msra.mxu1 %v1519_v10  ;;  %v1538_v23 = vld [vmem:[#allocation11 + $0xa4] ss:$16 sps:$4 sm:$0xff]   ;;  %v1540_v24 = vld [vmem:[#allocation11 + $0xac] ss:$16 sps:$4 sm:$0xff]   ;;  %v1542_v25 = vld [vmem:[#allocation11 + $0xa0] ss:$16 sps:$4 sm:$0xff]  }
  0xd5   : > { %628 = vmatprep.subr.bf16.mxu0 %v1520_v11  ;;  %669 = vmatprep.subr.bf16.mxu1 %v1522_v12  ;;  %v1543_v26 = vld [vmem:[#allocation11 + $0xa8] ss:$16 sps:$4 sm:$0xff]   ;;  %v1544_v27 = vld [vmem:[#allocation11 + $0xc4] ss:$16 sps:$4 sm:$0xff]   ;;  %v1546_v28 = vld [vmem:[#allocation11 + $0xcc] ss:$16 sps:$4 sm:$0xff]  }
  0xd6   : > { %v1548_v29 = vld [vmem:[#allocation11 + $0xc0] ss:$16 sps:$4 sm:$0xff]   ;;  %v1549_v30 = vld [vmem:[#allocation11 + $0xc8] ss:$16 sps:$4 sm:$0xff]   ;;  %v1550_v31 = vld [vmem:[#allocation11 + $0xe4] ss:$16 sps:$4 sm:$0xff]  }
  0xd7   : > { %v1552_v32 = vld [vmem:[#allocation11 + $0xec] ss:$16 sps:$4 sm:$0xff]   ;;  %v1554_v33 = vld [vmem:[#allocation11 + $0xe0] ss:$16 sps:$4 sm:$0xff]   ;;  %v1555_v34 = vld [vmem:[#allocation11 + $0xe8] ss:$16 sps:$4 sm:$0xff]  }
  0xd8   : > { %629 = vmatpush1.bf16.msra.mxu0 %v1524_v13  ;;  %670 = vmatpush1.bf16.msra.mxu1 %v1525_v14  ;;  %v397_v35 = vld [vmem:[#allocation2] sm:$0xff]  ;;  %v1558_v36 = vld [vmem:[#allocation10 + $0x4] ss:$16 sps:$4 sm:$0xff]   ;;  %v1556_v39 = vld [vmem:[#allocation10] ss:$16 sps:$4 sm:$0xff]   ;;  %s1181_s19 = sshll.u32 %s2204_s13, 4  ;;  %s2241_s19 = int_to_ptr.vmem [resolvable:$true] %s1181_s19 }
  0xd9   : > { %630 = vmatprep.subr.bf16.mxu0 %v1526_v15  ;;  %671 = vmatprep.subr.bf16.mxu1 %v1528_v16  ;;  %v1561_v37 = vld [vmem:[#allocation10 + $0xc] ss:$16 sps:$4 sm:$0xff]   ;;  %v431_v38 = vpack.c.bf16 %v397_v35, %v397_v35  ;;  %v1559_v40 = vld [vmem:[#allocation10 + $0x8] ss:$16 sps:$4 sm:$0xff]   ;;  %v1564_v41 = vld [vmem:[#allocation10 + $0x24] ss:$16 sps:$4 sm:$0xff]  }
  0xda   : > { %v1567_v42 = vld [vmem:[#allocation10 + $0x2c] ss:$16 sps:$4 sm:$0xff]   ;;  %v1562_v43 = vld [vmem:[#allocation10 + $0x20] ss:$16 sps:$4 sm:$0xff]   ;;  %v1565_v44 = vld [vmem:[#allocation10 + $0x28] ss:$16 sps:$4 sm:$0xff]  }
  0xdb   : > { %v1570_v45 = vld [vmem:[#allocation10 + $0x44] ss:$16 sps:$4 sm:$0xff]   ;;  %v1573_v46 = vld [vmem:[#allocation10 + $0x4c] ss:$16 sps:$4 sm:$0xff]   ;;  %v1568_v47 = vld [vmem:[#allocation10 + $0x40] ss:$16 sps:$4 sm:$0xff]  }
  0xdc   : > { %631 = vmatpush1.bf16.msra.mxu0 %v1530_v17  ;;  %672 = vmatpush1.bf16.msra.mxu1 %v1531_v18  ;;  %v1571_v48 = vld [vmem:[#allocation10 + $0x48] ss:$16 sps:$4 sm:$0xff]   ;;  %v1576_v49 = vld [vmem:[#allocation10 + $0x64] ss:$16 sps:$4 sm:$0xff]   ;;  %v1579_v50 = vld [vmem:[#allocation10 + $0x6c] ss:$16 sps:$4 sm:$0xff]  }
  0xdd   : > { %632 = vmatprep.subr.bf16.mxu0 %v1532_v19  ;;  %673 = vmatprep.subr.bf16.mxu1 %v1534_v20  ;;  %v1574_v51 = vld [vmem:[#allocation10 + $0x60] ss:$16 sps:$4 sm:$0xff]   ;;  %v1577_v52 = vld [vmem:[#allocation10 + $0x68] ss:$16 sps:$4 sm:$0xff]   ;;  %v1582_v53 = vld [vmem:[#allocation10 + $0x84] ss:$16 sps:$4 sm:$0xff]  }
  0xde   : > { %v1585_v54 = vld [vmem:[#allocation10 + $0x8c] ss:$16 sps:$4 sm:$0xff]   ;;  %v1580_v55 = vld [vmem:[#allocation10 + $0x80] ss:$16 sps:$4 sm:$0xff]   ;;  %v1583_v56 = vld [vmem:[#allocation10 + $0x88] ss:$16 sps:$4 sm:$0xff]  }
  0xdf   : > { %v1588_v57 = vld [vmem:[#allocation10 + $0xa4] ss:$16 sps:$4 sm:$0xff]   ;;  %v1591_v58 = vld [vmem:[#allocation10 + $0xac] ss:$16 sps:$4 sm:$0xff]   ;;  %v1586_v59 = vld [vmem:[#allocation10 + $0xa0] ss:$16 sps:$4 sm:$0xff]  }
  0xe0   : > { %633 = vmatpush1.bf16.msra.mxu0 %v1536_v21  ;;  %674 = vmatpush1.bf16.msra.mxu1 %v1537_v22  ;;  %v1589_v60 = vld [vmem:[#allocation10 + $0xa8] ss:$16 sps:$4 sm:$0xff]   ;;  %v1594_v61 = vld [vmem:[#allocation10 + $0xc4] ss:$16 sps:$4 sm:$0xff]   ;;  %v1597_v62 = vld [vmem:[#allocation10 + $0xcc] ss:$16 sps:$4 sm:$0xff]  }
  0xe1   : > { %634 = vmatprep.subr.bf16.mxu0 %v1538_v23  ;;  %675 = vmatprep.subr.bf16.mxu1 %v1540_v24  ;;  %v1592_v63 = vld [vmem:[#allocation10 + $0xc0] ss:$16 sps:$4 sm:$0xff]   ;;  %v1595_v0 = vld [vmem:[#allocation10 + $0xc8] ss:$16 sps:$4 sm:$0xff]   ;;  %v1600_v1 = vld [vmem:[#allocation10 + $0xe4] ss:$16 sps:$4 sm:$0xff]  }
  0xe2   : > { %v1603_v2 = vld [vmem:[#allocation10 + $0xec] ss:$16 sps:$4 sm:$0xff]   ;;  %v1598_v3 = vld [vmem:[#allocation10 + $0xe0] ss:$16 sps:$4 sm:$0xff]   ;;  %v1601_v5 = vld [vmem:[#allocation10 + $0xe8] ss:$16 sps:$4 sm:$0xff]  }
  0xe3   : > { %v398_v6 = vld [vmem:[%s2189_s14] sm:$0xf]  ;;  %v1606_v7 = vld [vmem:[#allocation13 + $0x4] ss:$8 sps:$4 sm:$0xff]   ;;  %v1604_v8 = vld [vmem:[#allocation13] ss:$8 sps:$4 sm:$0xff]  }
  0xe4   : > { %635 = vmatpush1.bf16.msra.mxu0 %v1542_v25  ;;  %676 = vmatpush1.bf16.msra.mxu1 %v1543_v26  ;;  %v1609_v9 = vld [vmem:[#allocation13 + $0x14] ss:$8 sps:$4 sm:$0xff]   ;;  %v1607_v10 = vld [vmem:[#allocation13 + $0x10] ss:$8 sps:$4 sm:$0xff]   ;;  %v1612_v11 = vld [vmem:[#allocation13 + $0x24] ss:$8 sps:$4 sm:$0xff]  }
  0xe5   : > { %636 = vmatprep.subr.bf16.mxu0 %v1544_v27  ;;  %677 = vmatprep.subr.bf16.mxu1 %v1546_v28  ;;  %v1610_v12 = vld [vmem:[#allocation13 + $0x20] ss:$8 sps:$4 sm:$0xff]   ;;  %v1615_v13 = vld [vmem:[#allocation13 + $0x34] ss:$8 sps:$4 sm:$0xff]   ;;  %v1613_v14 = vld [vmem:[#allocation13 + $0x30] ss:$8 sps:$4 sm:$0xff]  }
  0xe6   : > { %v1618_v15 = vld [vmem:[#allocation13 + $0x44] ss:$8 sps:$4 sm:$0xff]   ;;  %v1616_v16 = vld [vmem:[#allocation13 + $0x40] ss:$8 sps:$4 sm:$0xff]   ;;  %v1619_v17 = vld [vmem:[#allocation13 + $0x50] ss:$8 sps:$4 sm:$0xff]  }
  0xe7   : > { %v1624_v18 = vld [vmem:[#allocation13 + $0x64] ss:$8 sps:$4 sm:$0xff]   ;;  %v1622_v19 = vld [vmem:[#allocation13 + $0x60] ss:$8 sps:$4 sm:$0xff]   ;;  %v1627_v20 = vld [vmem:[#allocation13 + $0x74] ss:$8 sps:$4 sm:$0xff]  }
  0xe8   : > { %637 = vmatpush1.bf16.msra.mxu0 %v1548_v29  ;;  %678 = vmatpush1.bf16.msra.mxu1 %v1549_v30  ;;  %v1625_v21 = vld [vmem:[#allocation13 + $0x70] ss:$8 sps:$4 sm:$0xff]   ;;  %v950_v30 = vlaneseq  ;;  %s1167_s11 = scalar_lea.sflag [#allocation6], %s2186_s22  ;;  %s1814_s12 = scalar_lea.vmem %s2241_s19, 256 }
  0xe9   : > { %638 = vmatprep.subr.bf16.mxu0 %v1550_v31  ;;  %679 = vmatprep.subr.bf16.mxu1 %v1552_v32  ;;  %p1815_p11 = scmp.ne.s32.totalorder %s2241_s19, %s1814_s12  ;;  %p2318_p3 = scmp.ne.s32.totalorder %s2305_s0, 0 }
  0xea   : > { %v2214_v31 = vshrl.u32 %v950_v30, 7  ;;  %s1909_s9 = smov [#allocation14]  }
  0xeb   : > { %p1816_p1 = pnand %p1815_p11, %p2318_p3  ;;  %s1818_s14 = sshll.u32 %s1909_s9, 4  ;;  %s1819_s14 = int_to_ptr.vmem [resolvable:$false] %s1818_s14 }
  0xec   : > { %639 = vmatpush1.bf16.msra.mxu0 %v1554_v33  ;;  %680 = vmatpush1.bf16.msra.mxu1 %v1555_v34  ;;  %v952_v32 = vsub.s32 0, %v2214_v31  ;;  %v948_v33 = vld [vmem:[%s2288_s4] sm:$0xf]  ;;  %v956_v34 = vsub.s32 1, %v2214_v31  ;;  %s1820_s10 = scalar_lea.vmem %s1819_s14, 512  ;;  %p1821_p9 = scmp.lt.s32.totalorder %s2241_s19, %s1819_s14 }
  0xed   : > { %866 = vmatprep.subr.bf16.mxu0 %v1558_v36  ;;  %907 = vmatprep.subr.bf16.mxu1 %v1561_v37  ;;  %p1817_p4 = pneg %p1816_p1  ;;  %p1822_p8 = scmp.lt.s32.totalorder %s1820_s10, %s1814_s12 }
  0xee   : > { %v953_v35 = vrot.slane %v948_v33, %v952_v32 }
  0xef   : > { %657 = vmatmul.mubr.bf16.vlgmr.msra.gmra.mrb[0].mxu0 %v431_v38  ;;  %698 = vmatmul.mubr.bf16.vlgmr.msra.gmra.mrb[0].mxu1 %v431_v38  ;;  %v957_v38 = vrot.slane %v948_v33, %v956_v34  ;;  %p1823_p10 = por %p1822_p8, %p1821_p9 }
  0xf0   : > { %867 = vmatpush1.bf16.msra.mxu0 %v1556_v39  ;;  %908 = vmatpush1.bf16.msra.mxu1 %v1559_v40 }
  0xf1   : > { %868 = vmatprep.subr.bf16.mxu0 %v1564_v41  ;;  %909 = vmatprep.subr.bf16.mxu1 %v1567_v42  ;;  %p1824_p12 = pnand %p1823_p10, %p1817_p4 }
  0xf2   : > { %898 = vmatprep.mubr.bf16.mxu0 %v1908_v4  ;;  %939 = vmatprep.mubr.bf16.mxu1 %v1908_v4 }
  0xf4   : > { %869 = vmatpush1.bf16.msra.mxu0 %v1562_v43  ;;  %910 = vmatpush1.bf16.msra.mxu1 %v1565_v44 }
  0xf5   : > { %870 = vmatprep.subr.bf16.mxu0 %v1570_v45  ;;  %911 = vmatprep.subr.bf16.mxu1 %v1573_v46  ;;  %v964_v45 = vsub.s32 3, %v2214_v31 }
  0xf8   : > { %871 = vmatpush1.bf16.msra.mxu0 %v1568_v47  ;;  %912 = vmatpush1.bf16.msra.mxu1 %v1571_v48 }
  0xf9   : > { %872 = vmatprep.subr.bf16.mxu0 %v1576_v49  ;;  %913 = vmatprep.subr.bf16.mxu1 %v1579_v50 }
  0xfc   : > { %873 = vmatpush1.bf16.msra.mxu0 %v1574_v51  ;;  %914 = vmatpush1.bf16.msra.mxu1 %v1577_v52 }
  0xfd   : > { %874 = vmatprep.subr.bf16.mxu0 %v1582_v53  ;;  %915 = vmatprep.subr.bf16.mxu1 %v1585_v54  ;;  %v960_v53 = vsub.s32 2, %v2214_v31 }
 0x100   : > { %875 = vmatpush1.bf16.msra.mxu0 %v1580_v55  ;;  %916 = vmatpush1.bf16.msra.mxu1 %v1583_v56  ;;  %v965_v55 = vrot.slane %v948_v33, %v964_v45 }
 0x101   : > { %876 = vmatprep.subr.bf16.mxu0 %v1588_v57  ;;  %917 = vmatprep.subr.bf16.mxu1 %v1591_v58  ;;  %v961_v58 = vrot.slane %v948_v33, %v960_v53 }
 0x104   : > { %877 = vmatpush1.bf16.msra.mxu0 %v1586_v59  ;;  %918 = vmatpush1.bf16.msra.mxu1 %v1589_v60 }
 0x105   : > { %878 = vmatprep.subr.bf16.mxu0 %v1594_v61  ;;  %919 = vmatprep.subr.bf16.mxu1 %v1597_v62 }
 0x108   : > { %879 = vmatpush1.bf16.msra.mxu0 %v1592_v63  ;;  %920 = vmatpush1.bf16.msra.mxu1 %v1595_v0 }
 0x109   : > { %880 = vmatprep.subr.bf16.mxu0 %v1600_v1  ;;  %921 = vmatprep.subr.bf16.mxu1 %v1603_v2 }
 0x10c   : > { %881 = vmatpush1.bf16.msra.mxu0 %v1598_v3  ;;  %922 = vmatpush1.bf16.msra.mxu1 %v1601_v5 }
 0x10d   : > { %1123 = vmatprep.subr.bf16.mxu0 %v1606_v7 }
 0x10f   : > { %899 = vmatmul.mubr.bf16.vlgmr.msra.gmra.mrb[4].mxu0 %v398_v6  ;;  %940 = vmatmul.mubr.bf16.vlgmr.msra.gmra.mrb[4].mxu1 %v398_v6 }
 0x110   : > { %1155 = vmatprep.mubr.bf16.mxu0 %v1908_v4  ;;  %1124 = vmatpush1.bf16.msra.mxu0 %v1604_v8  ;;  %v1621_v4 = vld [vmem:[#allocation13 + $0x54] ss:$8 sps:$4 sm:$0xff]  }
 0x111   : > { %1125 = vmatprep.subr.bf16.mxu0 %v1609_v9 }
 0x114   : > { %1126 = vmatpush1.bf16.msra.mxu0 %v1607_v10 }
 0x115   : > { %1127 = vmatprep.subr.bf16.mxu0 %v1612_v11 }
 0x118   : > { %1128 = vmatpush1.bf16.msra.mxu0 %v1610_v12 }
 0x119   : > { %1129 = vmatprep.subr.bf16.mxu0 %v1615_v13 }
 0x11c   : > { %1130 = vmatpush1.bf16.msra.mxu0 %v1613_v14  ;;  %v1004_v14 = vld [vmem:[#allocation3] sm:$0xff] }
 0x11d   : > { %1131 = vmatprep.subr.bf16.mxu0 %v1618_v15 }
 0x120   : > { %1132 = vmatpush1.bf16.msra.mxu0 %v1616_v16 }
 0x121   : > { %1133 = vmatprep.subr.bf16.mxu0 %v1621_v4 }
 0x124   : > { %1134 = vmatpush1.bf16.msra.mxu0 %v1619_v17 }
 0x125   : > { %1135 = vmatprep.subr.bf16.mxu0 %v1624_v18 }
 0x128   : > { %1136 = vmatpush1.bf16.msra.mxu0 %v1622_v19 }
 0x129   : > { %1137 = vmatprep.subr.bf16.mxu0 %v1627_v20 }
 0x12c   : > { %1138 = vmatpush1.bf16.msra.mxu0 %v1625_v21 }
 0x1c2   : > { %v658_v22 = vpop.f32.mrb[0].mxu0  ;;  %v699_v23 = vpop.f32.mrb[0].mxu1 }
 0x1c3   : > { %v660_v24 = vpop.f32.mrb[1].mxu0  ;;  %v701_v25 = vpop.f32.mrb[1].mxu1 }
 0x1c4   : > { %v662_v26 = vpop.f32.mrb[2].mxu0  ;;  %v703_v27 = vpop.f32.mrb[2].mxu1 }
 0x1c5   : > { %v663_v28 = vpop.f32.mrb[3].mxu0  ;;  %v704_v29 = vpop.f32.mrb[3].mxu1  ;;  %v1031_v26 = vld [vmem:[%s2291_s7] sm:$0x3] }
 0x1c6   : > { %v1036_v27 = vrot.slane %v1031_v26, %v952_v32  ;;  %v1040_v28 = vrot.slane %v1031_v26, %v956_v34 }
 0x1e2   : > { %v900_v36 = vpop.f32.mrb[4].mxu0  ;;  %v941_v37 = vpop.f32.mrb[4].mxu1 }
 0x1e3   : > { %v901_v39 = vadd.f32 %v900_v36, %v658_v22  ;;  %v942_v40 = vadd.f32 %v941_v37, %v699_v23  ;;  %v902_v41 = vpop.f32.mrb[5].mxu0  ;;  %v943_v42 = vpop.f32.mrb[5].mxu1 }
 0x1e4   : > { %v903_v43 = vadd.f32 %v902_v41, %v660_v24  ;;  %v944_v44 = vadd.f32 %v943_v42, %v701_v25  ;;  %v904_v46 = vpop.f32.mrb[6].mxu0  ;;  %v945_v47 = vpop.f32.mrb[6].mxu1 }
 0x1e5   : > { %v970_v48 = vadd.f32 %v953_v35, %v901_v39  ;;  %v905_v49 = vpop.f32.mrb[7].mxu0  ;;  %v946_v50 = vpop.f32.mrb[7].mxu1  ;;  %v972_v60 = vadd.f32 %v961_v58, %v942_v40 }
 0x1e6   : > { %v971_v51 = vadd.f32 %v957_v38, %v903_v43  ;;  %v973_v59 = vadd.f32 %v965_v55, %v944_v44 }
 0x1e7   : > { %v974_v52 = vpack.c.bf16 %v970_v48, %v970_v48  ;;  %v976_v62 = vpack.c.bf16 %v972_v60, %v972_v60 }
 0x1e8   : > { %v975_v54 = vpack.c.bf16 %v971_v51, %v971_v51  ;;  %v977_v61 = vpack.c.bf16 %v973_v59, %v973_v59 }
 0x1e9   : > { %v1381_v56 = vmul.bf16 3216621497, %v974_v52 }
 0x1ea   : > { %v1382_v57 = vmul.bf16 3216621497, %v975_v54  ;;  %v1383_v63 = vmul.bf16 3216621497, %v977_v61 }
 0x1eb   : > { %1628 = vpow.bf16 %v1381_v56 }
 0x1ec   : > { %1630 = vpow.bf16 %v1382_v57 }
 0x1ed   : > { %1632 = vtanh.bf16 %v976_v62 }
 0x1ee   : > { %1634 = vpow.bf16 %v1383_v63 }
 0x1f6   : > { %v1629_v0 = vpop.eup %1628 }
 0x1f7   : > { %v1631_v1 = vpop.eup %1630  ;;  %v982_v2 = vadd.bf16 1065369472, %v1629_v0 }
 0x1f8   : > { %v990_v3 = vadd.bf16 1065369472, %v1631_v1  ;;  %v1633_v5 = vpop.eup %1632 }
 0x1f9   : > { %1636 = vrcp.bf16 %v982_v2  ;;  %v1635_v6 = vpop.eup %1634  ;;  %v995_v13 = vunpack.c.l.bf16 %v1633_v5 }
 0x1fa   : > { %1638 = vrcp.bf16 %v990_v3  ;;  %v1000_v11 = vadd.bf16 1065369472, %v1635_v6 }
 0x1fc   : > { %1640 = vrcp.bf16 %v1000_v11 }
 0x204   : > { %v1637_v7 = vpop.eup %1636 }
 0x205   : > { %v1639_v8 = vpop.eup %1638  ;;  %v984_v9 = vmul.bf16 1065369472, %v1637_v7 }
 0x206   : > { %v992_v10 = vmul.bf16 1065369472, %v1639_v8 }
 0x207   : > { %v985_v12 = vunpack.c.l.bf16 %v984_v9  ;;  %v1641_v19 = vpop.eup %1640 }
 0x208   : > { %v993_v15 = vunpack.c.l.bf16 %v992_v10  ;;  %v1002_v20 = vmul.bf16 1065369472, %v1641_v19 }
 0x209   : > { %v1006_v16 = vmul.f32 %v995_v13, %v985_v12 }
 0x20a   : > { %v1005_v4 = vmul.f32 %v1004_v14, %v993_v15  ;;  %v1003_v22 = vunpack.c.l.bf16 %v1002_v20 }
 0x20c   : > { %v1007_v17 = vadd.f32 %v1006_v16, %v1005_v4 }
 0x20e   : > { %1012 = vst [vmem:[#allocation3] sm:$0xff] %v1007_v17  ;;  %v1008_v18 = vpack.c.bf16 %v1007_v17, %v1007_v17 }
 0x210   : > { %1642 = vtanh.bf16 %v1008_v18 }
 0x21b   : > { %v1643_v21 = vpop.eup %1642 }
 0x21c   : > { %v1010_v23 = vunpack.c.l.bf16 %v1643_v21 }
 0x21e   : > { %v1011_v24 = vmul.f32 %v1010_v23, %v1003_v22 }
 0x220   : > { %1013 = vst [vmem:[#allocation2] sm:$0xff] %v1011_v24  ;;  %v1014_v25 = vpack.c.bf16 %v1011_v24, %v1011_v24 }
 0x222   : > { %1156 = vmatmul.mubr.bf16.vlgmr.msra.gmra.mrb[8].mxu0 %v1014_v25 }
 0x2f5   : > { %v1157_v29 = vpop.f32.mrb[8].mxu0 }
 0x2f6   : > { %v1158_v30 = vadd.f32 %v1157_v29, %v1036_v27  ;;  %v1159_v33 = vpop.f32.mrb[9].mxu0 }
 0x2f7   : > { %v1160_v35 = vadd.f32 %v1159_v33, %v1040_v28  ;;  %v1161_v36 = vpop.f32.mrb[10].mxu0 }
 0x2f8   : > { %1164 = vst [vmem:[%s2204_s13] sm:$0xff] %v1158_v30  ;;  %v1162_v31 = vpop.f32.mrb[11].mxu0 }
 0x2f9   : > { %1165 = vst [vmem:[%s2204_s13 + $0x8] sm:$0xff] %v1160_v35 }
 0x2fa   : > { %1827 = shalt.err (!%p1824_p12)
}
 0x2fb   : > { %s1828_s22 = scalar_lea.hbm %s2239_s23, 256  ;;  %s1832_s18 = scalar_lea.hbm %s2292_s8, 1280 }
 0x2fc   : > { %p1829_p6 = scmp.ne.s32.totalorder %s2239_s23, %s1828_s22  ;;  %p1833_p13 = scmp.lt.u32.totalorder %s2239_s23, %s2292_s8 }
 0x2fd   : > { %p1834_p5 = scmp.lt.u32.totalorder %s1832_s18, %s1828_s22  ;;  %p1836_p11 = scmp.lt.u32.totalorder %s1828_s22, %s2239_s23 }
 0x2fe   : > { %p1830_p0 = pnand %p1829_p6, %p2318_p3 }
 0x2ff   : > { %p1835_p7 = por %p1834_p5, %p1833_p13 }
 0x300   : > { %p1831_p2 = pneg %p1830_p0 }
 0x301   : > { %p1837_p1 = por %p1836_p11, %p1835_p7 }
 0x303   : > { %p1838_p4 = pnand %p1837_p1, %p1831_p2 }
 0x305   : > { %1841 = shalt.err (!%p1838_p4)
}
 0x306   : > { %1428 = dma.vmem_to_hbm [thread:$0]  (%p2318_p3), %s2241_s19, 256, %s2239_s23, %s1167_s11  }
 0x307 PF: > { %p1465_p9 = scmp.ge.s32.totalorder %s1896_s30, 2  ;;  %s1193_s1 = sand.u32 1, %s1884_s27  }
 0x308   : > { %p2319_p8 = scmp.ne.s32.totalorder %s2306_s26, 0  ;;  %s1194_s24 = scalar_lea.sflag [#allocation6], %s1193_s1 }
 0x30a   : > { %p1451_p10 = pnand %p1465_p9, %p2319_p8 }
 0x30c   : > { %1879 = dma.done.wait (!%p1451_p10), %s1194_s24, 256  }
 0x30d   : > { %1881 = vsyncadd (!%p1451_p10), %s1194_s24, 4294967040  ;;  %p21_p12 = scmp.ge.s32.totalorder %s2106_s17, 7   ;;  %s2320_s27 = smov %s1888_s28 }
 0x30e   : > { %s2321_s28 = smov %s1892_s29  ;;  %s2322_s29 = smov %s2118_s15 }
 0x30f   : > { %s2323_s30 = smov %s2106_s17  ;;  %23 = sbr.rel (!%p21_p12) target bundleno = 9 (0x9), region = 120 }
 0x316   :  { %1199 = vsyncpa [#allocation5], 1 }
 0x317   :  { %1201 = vsyncpa [#allocation5 + $0x1], 1 }
 0x318   :  { %1202 = vsyncpa [#allocation8], 1 }
 0x319   :  { %1203 = vsyncpa [#allocation12], 1 }
 0x31a   :  { %1204 = vsyncpa [#allocation6], 1 }
 0x31b   :  { %1206 = vsyncpa [#allocation6 + $0x1], 1 }

</bundles_post_ra>
